<compile_context>
chip_gen: v6e
topology: v6e:2x2x1
jax: 0.10.0
libtpu: 0.0.40
codegen_flags: <defaults>
</compile_context>

<pallas_src>
import functools

import jax
import jax.numpy as jnp
from jax.experimental import pallas as pl
from jax.experimental.pallas import tpu as pltpu


def _channel_attention_kernel(x_ref, w1t_ref, w2t_ref, o_ref,
                              sum_acc, max_acc, p_acc, *,
                              L, L_TILE, B_TILE, GRID_L):
    # x_ref   : (B_TILE, C, L_TILE)   input block (auto-pipelined)
    # w1t_ref : (C, Cr)               whole weight, resident in VMEM
    # w2t_ref : (Cr, C)               whole weight, resident in VMEM
    # o_ref   : (B_TILE, C, 1)        output block
    # sum_acc : (B_TILE, C, 128) f32  lane-shaped running-sum scratch
    # max_acc : (B_TILE, C, 128) f32  lane-shaped running-max scratch
    # p_acc   : (2*B_TILE, C)    f32  staging for the fused fc LHS
    inv_L = 1.0 / float(L)

    def finalize(avg, mx):
        # avg / mx : (B_TILE, C) f32.  Fuse both fc paths into one MXU pass.
        p_acc[0:B_TILE, :] = avg
        p_acc[B_TILE:2 * B_TILE, :] = mx
        p = p_acc[...]                                        # (2*B_TILE, C)
        h = jnp.maximum(
            jnp.dot(p, w1t_ref[...], preferred_element_type=jnp.float32), 0.0)
        y = jnp.dot(h, w2t_ref[...], preferred_element_type=jnp.float32)
        out = y[0:B_TILE, :] + y[B_TILE:2 * B_TILE, :]        # (B_TILE, C)
        o_ref[...] = jax.nn.sigmoid(out)[:, :, None].astype(o_ref.dtype)

    if GRID_L == 1:
        # Whole L fits in one block: no cross-step accumulation, no masking
        # (the block equals the full array extent along L).
        x = x_ref[...].astype(jnp.float32)
        finalize(jnp.sum(x, axis=-1) * inv_L, jnp.max(x, axis=-1))
        return

    l = pl.program_id(1)
    n_chunks = L_TILE // 128            # wrapper guarantees L_TILE % 128 == 0
    rem = L - (GRID_L - 1) * L_TILE     # valid lanes in the (ragged) last tile

    @pl.when(l == 0)
    def _():
        sum_acc[...] = jnp.zeros(sum_acc.shape, sum_acc.dtype)
        max_acc[...] = jnp.full(max_acc.shape, -jnp.inf, max_acc.dtype)

    def accumulate(masked):
        # Pure VPU adds/maxes into lane-shaped accumulators; the cross-lane
        # reduce is deferred to finalize so the steady-state step stays
        # vld + VALU and fully hides under the incoming x DMA.
        s = sum_acc[...]
        m = max_acc[...]
        for j in range(n_chunks):
            lo = j * 128
            if masked and lo >= rem:
                break                               # fully out-of-range chunk
            c = x_ref[:, :, lo:lo + 128].astype(jnp.float32)
            if masked and lo + 128 > rem:
                lane = jax.lax.broadcasted_iota(jnp.int32, c.shape, 2)
                valid = lane < (rem - lo)
                s = s + jnp.where(valid, c, 0.0)
                m = jnp.maximum(m, jnp.where(valid, c, -jnp.inf))
            else:
                s = s + c
                m = jnp.maximum(m, c)
        sum_acc[...] = s
        max_acc[...] = m

    if L % L_TILE == 0:
        accumulate(masked=False)

        @pl.when(l == GRID_L - 1)
        def _():
            finalize(jnp.sum(sum_acc[...], axis=-1) * inv_L,
                     jnp.max(max_acc[...], axis=-1))
    else:
        # Ragged L: only the last tile pays for the masking.
        @pl.when(l < GRID_L - 1)
        def _():
            accumulate(masked=False)

        @pl.when(l == GRID_L - 1)
        def _():
            accumulate(masked=True)
            finalize(jnp.sum(sum_acc[...], axis=-1) * inv_L,
                     jnp.max(max_acc[...], axis=-1))


def channel_attention(x, w1, w2, *, b_tile=None, l_tile=None,
                      vmem_budget_bytes=None):
    """x: (B, C, L); w1: (C//r, C); w2: (C, C//r). Returns (B, C, 1) f32."""
    B, C, L = x.shape
    Cr = w1.shape[0]
    assert w1.shape == (Cr, C) and w2.shape == (C, Cr)
    itemsize = jnp.dtype(x.dtype).itemsize

    # Pre-transpose weights host-side so in-kernel matmuls need no relayout.
    w1t = jnp.asarray(w1, jnp.float32).T              # (C, Cr)
    w2t = jnp.asarray(w2, jnp.float32).T              # (Cr, C)

    # ---- per-generation VMEM budget (v7x has only 64 MiB per TensorCore) ----
    try:
        info = pltpu.get_tpu_info()
        vmem_cap = int(getattr(info, "vmem_capacity_bytes", 64 * 1024 * 1024))
    except Exception:
        vmem_cap = 64 * 1024 * 1024                   # conservative fallback
    if vmem_budget_bytes is None:
        vmem_budget_bytes = max(min(vmem_cap - 16 * 1024 * 1024,
                                    96 * 1024 * 1024),
                                24 * 1024 * 1024)

    # ---- batch tile: divisor of B (avoids reducing uninitialized padded
    # rows), grid_b >= 2 when B >= 2 so the 'parallel' axis can shard across
    # v7x's two TensorCores; up to 64 rows when B is large. ----
    if b_tile is None:
        if B <= 1:
            b_tile = 1
        else:
            cap = min(max(B // 2, 1), 64)
            b_tile = 1
            for d in range(cap, 0, -1):
                if B % d == 0:
                    b_tile = d
                    break
    b_tile = max(1, min(int(b_tile), B))
    grid_b = pl.cdiv(B, b_tile)

    # ---- L tile: as large as the budget allows (pure HBM streaming; 512+
    # lane tiles approach the roofline). Multiple of 512 preferred, 128 min;
    # if all of L fits, take it in one block (single-shot path). ----
    fixed_bytes = (2 * b_tile * C * 128 * 4      # lane-shaped accumulators
                   + 2 * b_tile * C * 4          # p_acc staging
                   + 2 * C * Cr * 4              # resident weights
                   + 2 * b_tile * C * 4)         # double-buffered output block
    avail = max(vmem_budget_bytes - fixed_bytes, 1024 * 1024)
    max_lanes = max(avail // (2 * b_tile * C * itemsize), 128)

    if l_tile is None:
        if L <= max_lanes:
            l_tile = L
        elif max_lanes >= 512:
            l_tile = (max_lanes // 512) * 512
        else:
            l_tile = (max_lanes // 128) * 128
    l_tile = int(min(l_tile, L))
    if l_tile < L:
        l_tile = max((l_tile // 128) * 128, 128)  # tiled L must be 128-aligned
    grid_l = int(pl.cdiv(L, l_tile))

    kernel = functools.partial(_channel_attention_kernel,
                               L=L, L_TILE=l_tile, B_TILE=b_tile,
                               GRID_L=grid_l)

    # Explicit scoped-VMEM limit, clamped under physical VMEM (v7x: 64 MiB).
    x_block_bytes = b_tile * C * l_tile * itemsize
    need = 2 * x_block_bytes + fixed_bytes + 4 * 1024 * 1024
    vmem_limit = int(min(max(need, 16 * 1024 * 1024),
                         vmem_cap - 8 * 1024 * 1024,
                         100 * 1024 * 1024))

    cost = pl.CostEstimate(
        flops=2 * B * C * L + 8 * B * C * Cr,      # reduction + tiny fc matmuls
        transcendentals=B * C,                     # sigmoid
        bytes_accessed=itemsize * B * C * L + 4 * (2 * C * Cr + B * C),
    )

    return pl.pallas_call(
        kernel,
        out_shape=jax.ShapeDtypeStruct((B, C, 1), jnp.float32),
        grid_spec=pltpu.PrefetchScalarGridSpec(
            num_scalar_prefetch=0,
            grid=(grid_b, grid_l),
            in_specs=[
                pl.BlockSpec((b_tile, C, l_tile), lambda b, l: (b, 0, l)),
                # Weights: whole-array resident in VMEM (one copy, no
                # per-step double buffering).
                pl.BlockSpec(memory_space=pltpu.MemorySpace.VMEM),
                pl.BlockSpec(memory_space=pltpu.MemorySpace.VMEM),
            ],
            out_specs=pl.BlockSpec((b_tile, C, 1), lambda b, l: (b, 0, 0)),
            scratch_shapes=[
                pltpu.VMEM((b_tile, C, 128), jnp.float32),   # lane-shaped sum
                pltpu.VMEM((b_tile, C, 128), jnp.float32),   # lane-shaped max
                pltpu.VMEM((2 * b_tile, C), jnp.float32),    # fused fc LHS
            ],
        ),
        compiler_params=pltpu.CompilerParams(
            dimension_semantics=("parallel", "arbitrary"),
            vmem_limit_bytes=vmem_limit,
        ),
        cost_estimate=cost,
    )(x, w1t, w2t)


def reference(x, w1, w2):
    avg = jnp.mean(x, axis=-1)
    mx = jnp.max(x, axis=-1)

    def fc(p):
        return jnp.maximum(p @ w1.T, 0.0) @ w2.T

    return jax.nn.sigmoid(fc(avg) + fc(mx))[:, :, None]


if __name__ == "__main__":
    B, C, reduction = 2, 16, 4
    Cr = C // reduction

    key = jax.random.PRNGKey(0)
    kx, k1, k2, kx2 = jax.random.split(key, 4)

    # Conv1d kernel-size-1, bias=False weights:
    #   fc[0].weight : (C//r, C, 1) -> stored as (C//r, C)
    #   fc[2].weight : (C, C//r, 1) -> stored as (C, C//r)
    w1 = jax.random.normal(k1, (Cr, C), dtype=jnp.float32) * 0.1
    w2 = jax.random.normal(k2, (C, Cr), dtype=jnp.float32) * 0.1

    # Multi-tile L reduction: exercises init / lane-shaped accumulate /
    # finalize across the gridded reduction axis.
    L = 384
    x = jax.random.normal(kx, (B, C, L), dtype=jnp.float32)
    out = jax.block_until_ready(channel_attention(x, w1, w2, l_tile=128))
    ref = reference(x, w1, w2)
    assert out.shape == (B, C, 1)
    assert jnp.allclose(out, ref, atol=1e-5, rtol=1e-5)

    # Ragged last L tile: masking applied only on the final tile.
    L2 = 200
    x2 = jax.random.normal(kx2, (B, C, L2), dtype=jnp.float32)
    out2 = jax.block_until_ready(channel_attention(x2, w1, w2, l_tile=128))
    ref2 = reference(x2, w1, w2)
    assert out2.shape == (B, C, 1)
    assert jnp.allclose(out2, ref2, atol=1e-5, rtol=1e-5)

    # Default (VMEM-budget) sizing: whole L fits -> single-shot path.
    out3 = jax.block_until_ready(channel_attention(x2, w1, w2))
    assert jnp.allclose(out3, ref2, atol=1e-5, rtol=1e-5)

    print("KERNEL_OK")
</pallas_src>

<mosaic_0001>
module attributes {stable_mosaic.version = 11 : i64} {
  func.func @_channel_attention_kernel(%arg0: i32, %arg1: i32, %arg2: memref<1x16x128xf32, #tpu.memory_space<vmem>>, %arg3: memref<16x4xf32, #tpu.memory_space<vmem>>, %arg4: memref<4x16xf32, #tpu.memory_space<vmem>>, %arg5: memref<1x16x1xf32, #tpu.memory_space<vmem>>, %arg6: memref<1x16x128xf32, #tpu.memory_space<vmem>>, %arg7: memref<1x16x128xf32, #tpu.memory_space<vmem>>, %arg8: memref<2x16xf32, #tpu.memory_space<vmem>>) attributes {dimension_semantics = [#tpu.dimension_semantics<parallel>, #tpu.dimension_semantics<arbitrary>], iteration_bounds = array<i64: 2, 3>, scalar_prefetch = 0 : i64, scratch_operands = 3 : i64, tpu.core_type = #tpu.core_type<tc>, window_params = [{transform_indices = @transform_0, window_bounds = array<i64: 1, 16, 128>}, {pipeline_mode = #tpu.pipeline_mode<synchronous>, transform_indices = @transform_1, window_bounds = array<i64: 16, 4>}, {pipeline_mode = #tpu.pipeline_mode<synchronous>, transform_indices = @transform_2, window_bounds = array<i64: 4, 16>}, {transform_indices = @transform_3, window_bounds = array<i64: 1, 16, 1>}]} {
    %c0_i32 = arith.constant 0 : i32
    %0 = arith.cmpi eq, %arg1, %c0_i32 : i32
    %1 = arith.extui %0 : i1 to i32
    %c0_i32_0 = arith.constant 0 : i32
    %2 = arith.cmpi ne, %1, %c0_i32_0 : i32
    scf.if %2 {
      %cst = arith.constant 0.000000e+00 : f32
      %13 = vector.broadcast %cst : f32 to vector<1x16x128xf32>
      %c0_16 = arith.constant 0 : index
      %c0_17 = arith.constant 0 : index
      %c0_18 = arith.constant 0 : index
      %14 = vector.load %arg6[%c0_16, %c0_17, %c0_18] : memref<1x16x128xf32, #tpu.memory_space<vmem>>, vector<1x16x128xf32>
      tpu.vector_store %arg6[%c0_16, %c0_17, %c0_18], %13 {strides = array<i32>} : memref<1x16x128xf32, #tpu.memory_space<vmem>>, vector<1x16x128xf32>,
      %cst_19 = arith.constant 0xFF800000 : f32
      %15 = vector.broadcast %cst_19 : f32 to vector<1x16x128xf32>
      %c0_20 = arith.constant 0 : index
      %c0_21 = arith.constant 0 : index
      %c0_22 = arith.constant 0 : index
      %16 = vector.load %arg7[%c0_20, %c0_21, %c0_22] : memref<1x16x128xf32, #tpu.memory_space<vmem>>, vector<1x16x128xf32>
      tpu.vector_store %arg7[%c0_20, %c0_21, %c0_22], %15 {strides = array<i32>} : memref<1x16x128xf32, #tpu.memory_space<vmem>>, vector<1x16x128xf32>,
    } else {
    }
    %c0 = arith.constant 0 : index
    %c0_1 = arith.constant 0 : index
    %c0_2 = arith.constant 0 : index
    %3 = vector.load %arg6[%c0, %c0_1, %c0_2] : memref<1x16x128xf32, #tpu.memory_space<vmem>>, vector<1x16x128xf32>
    %c0_3 = arith.constant 0 : index
    %c0_4 = arith.constant 0 : index
    %c0_5 = arith.constant 0 : index
    %4 = vector.load %arg7[%c0_3, %c0_4, %c0_5] : memref<1x16x128xf32, #tpu.memory_space<vmem>>, vector<1x16x128xf32>
    %c0_6 = arith.constant 0 : index
    %c0_7 = arith.constant 0 : index
    %c0_8 = arith.constant 0 : index
    %5 = vector.load %arg2[%c0_6, %c0_7, %c0_8] : memref<1x16x128xf32, #tpu.memory_space<vmem>>, vector<1x16x128xf32>
    %6 = arith.addf %3, %5 : vector<1x16x128xf32>
    %7 = arith.maximumf %4, %5 : vector<1x16x128xf32>
    %c0_9 = arith.constant 0 : index
    %c0_10 = arith.constant 0 : index
    %c0_11 = arith.constant 0 : index
    %8 = vector.load %arg6[%c0_9, %c0_10, %c0_11] : memref<1x16x128xf32, #tpu.memory_space<vmem>>, vector<1x16x128xf32>
    tpu.vector_store %arg6[%c0_9, %c0_10, %c0_11], %6 {strides = array<i32>} : memref<1x16x128xf32, #tpu.memory_space<vmem>>, vector<1x16x128xf32>,
    %c0_12 = arith.constant 0 : index
    %c0_13 = arith.constant 0 : index
    %c0_14 = arith.constant 0 : index
    %9 = vector.load %arg7[%c0_12, %c0_13, %c0_14] : memref<1x16x128xf32, #tpu.memory_space<vmem>>, vector<1x16x128xf32>
    tpu.vector_store %arg7[%c0_12, %c0_13, %c0_14], %7 {strides = array<i32>} : memref<1x16x128xf32, #tpu.memory_space<vmem>>, vector<1x16x128xf32>,
    %c2_i32 = arith.constant 2 : i32
    %10 = arith.cmpi eq, %arg1, %c2_i32 : i32
    %11 = arith.extui %10 : i1 to i32
    %c0_i32_15 = arith.constant 0 : i32
    %12 = arith.cmpi ne, %11, %c0_i32_15 : i32
    scf.if %12 {
      %c0_16 = arith.constant 0 : index
      %c0_17 = arith.constant 0 : index
      %c0_18 = arith.constant 0 : index
      %13 = vector.load %arg6[%c0_16, %c0_17, %c0_18] : memref<1x16x128xf32, #tpu.memory_space<vmem>>, vector<1x16x128xf32>
      %cst = arith.constant dense<0.000000e+00> : vector<1x16xf32>
      %14 = vector.multi_reduction <add>, %13, %cst [2] : vector<1x16x128xf32> to vector<1x16xf32>
      %cst_19 = arith.constant 0.00260416674 : f32
      %15 = vector.broadcast %cst_19 : f32 to vector<1x16xf32>
      %16 = arith.mulf %14, %15 : vector<1x16xf32>
      %c0_20 = arith.constant 0 : index
      %c0_21 = arith.constant 0 : index
      %c0_22 = arith.constant 0 : index
      %17 = vector.load %arg7[%c0_20, %c0_21, %c0_22] : memref<1x16x128xf32, #tpu.memory_space<vmem>>, vector<1x16x128xf32>
      %cst_23 = arith.constant dense<0xFF800000> : vector<1x16xf32>
      %18 = vector.multi_reduction <maximumf>, %17, %cst_23 [2] : vector<1x16x128xf32> to vector<1x16xf32>
      %c0_24 = arith.constant 0 : index
      %c0_25 = arith.constant 0 : index
      %19 = vector.load %arg8[%c0_24, %c0_25] : memref<2x16xf32, #tpu.memory_space<vmem>>, vector<1x16xf32>
      tpu.vector_store %arg8[%c0_24, %c0_25], %16 {strides = array<i32>} : memref<2x16xf32, #tpu.memory_space<vmem>>, vector<1x16xf32>,
      %c1 = arith.constant 1 : index
      %c0_26 = arith.constant 0 : index
      %20 = vector.load %arg8[%c1, %c0_26] : memref<2x16xf32, #tpu.memory_space<vmem>>, vector<1x16xf32>
      tpu.vector_store %arg8[%c1, %c0_26], %18 {strides = array<i32>} : memref<2x16xf32, #tpu.memory_space<vmem>>, vector<1x16xf32>,
      %c0_27 = arith.constant 0 : index
      %c0_28 = arith.constant 0 : index
      %21 = vector.load %arg8[%c0_27, %c0_28] : memref<2x16xf32, #tpu.memory_space<vmem>>, vector<2x16xf32>
      %c0_29 = arith.constant 0 : index
      %c0_30 = arith.constant 0 : index
      %22 = vector.load %arg3[%c0_29, %c0_30] : memref<16x4xf32, #tpu.memory_space<vmem>>, vector<16x4xf32>
      %cst_31 = arith.constant dense<0.000000e+00> : vector<2x4xf32>
      %23 = tpu.matmul %21, %22, %cst_31 {dimension_numbers = #tpu.dot_dimension_numbers<[1], [0], [0], [1], [0, 0, 1, 1], [], []>} : vector<2x16xf32>, vector<16x4xf32>, vector<2x4xf32> -> vector<2x4xf32>
      %cst_32 = arith.constant 0.000000e+00 : f32
      %24 = vector.broadcast %cst_32 : f32 to vector<2x4xf32>
      %25 = arith.maximumf %23, %24 : vector<2x4xf32>
      %c0_33 = arith.constant 0 : index
      %c0_34 = arith.constant 0 : index
      %26 = vector.load %arg4[%c0_33, %c0_34] : memref<4x16xf32, #tpu.memory_space<vmem>>, vector<4x16xf32>
      %cst_35 = arith.constant dense<0.000000e+00> : vector<2x16xf32>
      %27 = tpu.matmul %25, %26, %cst_35 {dimension_numbers = #tpu.dot_dimension_numbers<[1], [0], [0], [1], [0, 0, 1, 1], [], []>} : vector<2x4xf32>, vector<4x16xf32>, vector<2x16xf32> -> vector<2x16xf32>
      %28 = vector.extract_strided_slice %27 {offsets = [0, 0], sizes = [1, 16], strides = [1, 1]} : vector<2x16xf32> to vector<1x16xf32>
      %29 = vector.extract_strided_slice %27 {offsets = [1, 0], sizes = [1, 16], strides = [1, 1]} : vector<2x16xf32> to vector<1x16xf32>
      %30 = arith.addf %28, %29 : vector<1x16xf32>
      %31 = arith.negf %30 : vector<1x16xf32>
      %32 = math.exp %31 : vector<1x16xf32>
      %cst_36 = arith.constant 1.000000e+00 : f32
      %33 = vector.broadcast %cst_36 : f32 to vector<1x16xf32>
      %34 = arith.addf %33, %32 : vector<1x16xf32>
      %35 = arith.divf %33, %34 : vector<1x16xf32>
      %36 = vector.shape_cast %35 : vector<1x16xf32> to vector<1x16x1xf32>
      %c0_37 = arith.constant 0 : index
      %c0_38 = arith.constant 0 : index
      %c0_39 = arith.constant 0 : index
      %37 = vector.load %arg5[%c0_37, %c0_38, %c0_39] : memref<1x16x1xf32, #tpu.memory_space<vmem>>, vector<1x16x1xf32>
      tpu.vector_store %arg5[%c0_37, %c0_38, %c0_39], %36 {strides = array<i32>} : memref<1x16x1xf32, #tpu.memory_space<vmem>>, vector<1x16x1xf32>,
    } else {
    }
    return
  }
  func.func @transform_0(%arg0: i32, %arg1: i32) -> (i32, i32, i32) {
    %c0_i32 = arith.constant 0 : i32
    %c0_i32_0 = arith.constant 0 : i32
    return %arg0, %c0_i32, %arg1 : i32, i32, i32
  }
  func.func @transform_1(%arg0: i32, %arg1: i32) -> (i32, i32) {
    %c0_i32 = arith.constant 0 : i32
    %c0_i32_0 = arith.constant 0 : i32
    %c0_i32_1 = arith.constant 0 : i32
    return %c0_i32, %c0_i32_0 : i32, i32
  }
  func.func @transform_2(%arg0: i32, %arg1: i32) -> (i32, i32) {
    %c0_i32 = arith.constant 0 : i32
    %c0_i32_0 = arith.constant 0 : i32
    %c0_i32_1 = arith.constant 0 : i32
    return %c0_i32, %c0_i32_0 : i32, i32
  }
  func.func @transform_3(%arg0: i32, %arg1: i32) -> (i32, i32, i32) {
    %c0_i32 = arith.constant 0 : i32
    %c0_i32_0 = arith.constant 0 : i32
    %c0_i32_1 = arith.constant 0 : i32
    return %arg0, %c0_i32, %c0_i32_0 : i32, i32, i32
  }
}

</mosaic_0001>

<bundles_post_ra>
// kernel: tpu_custom_call.1
= control target key start
LH: loop header
LB: loop body
LE: loop exit
PB: predicated region body
PF: predicated region fallthrough
CT: control target
= control target key end

     0   :  { %8 = vsyncpa [#allocation6], 0  ;;  %s919_s0 = inlined_call_operand.hbm [shape: f32[2,16,384], index: 0, kind: input, shape index: {}]   ;;  %s920_s1 = inlined_call_operand.vmem [shape: f32[16,4], index: 1, kind: input, shape index: {}]   ;;  %s921_s2 = inlined_call_operand.vmem [shape: f32[4,16], index: 2, kind: input, shape index: {}]   ;;  %s922_s3 = inlined_call_operand.vmem [shape: f32[2,16,1], index: 3, kind: output, shape index: {}]  }
   0x1   :  { %10 = vsyncpa [#allocation6 + $0x1], 0  ;;  %s781_s12 = smov 0   ;;  %s783_s13 = smov 0  }
   0x2   :  { %s785_s14 = smov 0   ;;  %s787_s15 = smov 0  }
   0x3   :  { %s789_s16 = smov 0   ;;  %s791_s17 = smov 0  }
   0x4   :  { %s793_s18 = smov 0   ;;  %s795_s19 = smov 0  }
   0x5 LB: > { %s538_s20 = sadd.s32 4294967295, %s751_s19   ;;  %s25_s21 = sadd.s32 1, %s743_s17  ;;  %s751_s19 = sphi %s795_s19, %s16_s19   ;;  %s747_s18 = sphi %s793_s18, %s932_s18   ;;  %s743_s17 = sphi %s791_s17, %s931_s17   ;;  %s739_s16 = sphi %s789_s16, %s930_s16   ;;  %s735_s15 = sphi %s787_s15, %s929_s15   ;;  %s731_s14 = sphi %s785_s14, %s928_s14   ;;  %s727_s13 = sphi %s783_s13, %s927_s13   ;;  %s723_s12 = sphi %s781_s12, %s926_s12  }
   0x6   : > { %p26_p0 = scmp.ge.s32.totalorder %s25_s21, 3  ;;  %s28_s22 = sadd.s32 1, %s747_s18 }
   0x7   : > { %s37_s23 = sadd.s32 1, %s731_s14  ;;  %p44_p1 = scmp.ne.s32.totalorder %s731_s14, %s727_s13 }
   0x8   : > { %s934_s21 = smov (%p26_p0, %s25_s21), 0  ;;  %s936_s22 = smov (!%p26_p0, %s28_s22), %s747_s18 }
   0x9   : > { %s33_s24 = ssub.s32 %s743_s17, %s934_s21  ;;  %p45_p2 = scmp.eq.s32.totalorder %s751_s19, 0 }
   0xa   : > { %p30_p3 = scmp.ge.s32.totalorder %s936_s22, 2  ;;  %p50_p4 = scmp.ne.s32.totalorder %s727_s13, %s723_s12 }
   0xb   : > { %p832_p5 = por %p45_p2, %p44_p1  ;;  %p51_p6 = scmp.eq.s32.totalorder %s538_s20, 0 }
   0xc   : > { %s938_s22 = smov (%p30_p3, %s936_s22), 0  ;;  %p581_p8 = scmp.lt.s32.totalorder %s751_s19, 6 }
   0xd   : > { %p838_p7 = por %p51_p6, %p50_p4  ;;  %s32_s27 = ssub.s32 %s747_s18, %s938_s22 }
   0xe   : > { %s34_s28 = sor.u32 %s33_s24, %s32_s27  ;;  %s148_s29 = sand.u32 1, %s731_s14  }
   0xf   : > { %p35_p9 = scmp.eq.s32.totalorder %s34_s28, 0  ;;  %s542_s30 = sshll.u32 %s148_s29, 4 }
  0x10   : > { %s574_s4 = smul.u32 6, %s747_s18  ;;  %s152_s8 = scalar_lea.vmem [#allocation5], %s542_s30 }
  0x11   : > { %s848_s5 = scalar_select %p35_p9, %s731_s14, %s37_s23  }
  0x12   : > { %s157_s6 = sadd.s32 %s743_s17, %s574_s4  ;;  %s160_s9 = sshll.u32 %s152_s8, 4  ;;  %s161_s9 = int_to_ptr.vmem [resolvable:$true] %s160_s9 }
  0x13   : > { %s543_s7 = sshll.u32 %s157_s6, 7  ;;  %p858_p10 = pnand %p581_p8, %p832_p5 }
  0x14   : > { %s159_s12 = scalar_lea.hbm %s919_s0, %s543_s7  ;;  %p544_p11 = scmp.ge.s32.totalorder %s751_s19, 1 }
  0x15   : > { %s149_s24 = scalar_lea.sflag [#allocation6], %s148_s29  ;;  %p659_p12 = pneg %p858_p10 }
  0x16   : > { %s670_s23 = scalar_lea.vmem %s161_s9, 256  ;;  %s753_s27 = smov [#allocation5]  }
  0x17   : > { %p671_p13 = scmp.ne.s32.totalorder %s161_s9, %s670_s23  ;;  %s675_s28 = sshll.u32 %s753_s27, 4  ;;  %s676_s28 = int_to_ptr.vmem [resolvable:$false] %s675_s28 }
  0x18   : > { %s677_s30 = scalar_lea.vmem %s676_s28, 512  ;;  %p678_p2 = scmp.lt.s32.totalorder %s161_s9, %s676_s28 }
  0x19   : > { %p673_p0 = pnand %p671_p13, %p659_p12  ;;  %p679_p3 = scmp.lt.s32.totalorder %s677_s30, %s670_s23 }
  0x1b   : > { %p674_p1 = pneg %p673_p0  ;;  %p680_p4 = por %p679_p3, %p678_p2 }
  0x1d   : > { %p681_p5 = pnand %p680_p4, %p674_p1 }
  0x1f   : > { %684 = shalt.err (!%p681_p5)
}
  0x20   : > { %s754_s25 = smov 384   ;;  %s755_s29 = smov 128  }
  0x21   : > { %s756_s4 = smov 8   ;;  %p168_p6 = scmp.lt.s32.totalorder %s751_s19, 7 }
  0x22   : > { %580 = dma.hbm_to_vmem [thread:$0]  (!%p858_p10), %s159_s12, 256, %s161_s9, %s149_s24, %s754_s25, %s755_s29, %s756_s4  }
  0x23   : > { %p169_p8 = pnand %p544_p11, %p168_p6 }
  0x24   : > { %s174_s6 = sand.u32 (!%p169_p8), 1, %s727_s13  }
  0x25   : > { %172 = sbr.rel (%p169_p8) target bundleno = 766 (0x2fe), region = 32  ;;  %s545_s7 = sshll.u32 (!%p169_p8), %s174_s6, 4 }
  0x26   : > { %s175_s8 = scalar_lea.sflag (!%p169_p8), [#allocation6], %s174_s6  ;;  %s178_s10 = scalar_lea.vmem (!%p169_p8), [#allocation5], %s545_s7 }
  0x2a   : > { %718 = dma.done.wait (%p838_p7), %s175_s8, 256  }
  0x2b   : > { %720 = vsyncadd (%p838_p7), %s175_s8, 4294967040  ;;  %p201_p9 = scmp.lt.s32.totalorder %s739_s16, 1  ;;  %p548_p10 = scmp.ne.s32.totalorder %s735_s15, 0 }
  0x2d   : > { %s940_s16 = smov (!%p201_p9, %s739_s16), 1  ;;  %209 = sbr.rel (%p548_p10) target bundleno = 53 (0x35), region = 40 }
  0x2e   : > { %s556_s9 = sshll.u32 %s940_s16, 4 }
  0x2f   : > { %s880_s20 = scalar_lea.vmem %s922_s3, %s556_s9 }
  0x32   : > { %v757_v0 = vmov 0.0   ;;  %v758_v1 = vmov -inf  }
  0x33   : > { %210 = vst [vmem:[#allocation2] sm:$0xff] %v757_v0  ;;  %211 = vst [vmem:[#allocation2 + $0x8] sm:$0xff] %v757_v0 }
  0x34   : > { %212 = vst [vmem:[#allocation3 + $0x8] sm:$0xff] %v758_v1  ;;  %213 = vst [vmem:[#allocation3] sm:$0xff] %v758_v1 }
  0x35 PF: > { %v218_v3 = vld [vmem:[%s178_s10] sm:$0xff]  ;;  %v219_v6 = vld [vmem:[%s178_s10 + $0x8] sm:$0xff]  ;;  %p549_p7 = scmp.ne.s32.totalorder %s735_s15, 2 }
  0x3a   : > { %v214_v2 = vld [vmem:[#allocation2] sm:$0xff]  ;;  %v215_v4 = vld [vmem:[#allocation2 + $0x8] sm:$0xff]  ;;  %231 = sbr.rel (%p549_p7) target bundleno = 766 (0x2fe), region = 44 }
  0x3b   : > { %v220_v5 = vadd.f32 %v218_v3, %v214_v2  ;;  %v216_v7 = vld [vmem:[#allocation3 + $0x8] sm:$0xff]  ;;  %v217_v8 = vld [vmem:[#allocation3] sm:$0xff]  ;;  %v221_v9 = vadd.f32 %v219_v6, %v215_v4 }
  0x3c   : > { %v222_v10 = vmax.f32 %v216_v7, %v218_v3  ;;  %v223_v11 = vmax.f32 %v217_v8, %v219_v6 }
  0x3d   : > { %224 = vst [vmem:[#allocation2] sm:$0xff] %v220_v5  ;;  %225 = vst [vmem:[#allocation2 + $0x8] sm:$0xff] %v221_v9 }
  0x3e   : > { %226 = vst [vmem:[#allocation3 + $0x8] sm:$0xff] %v222_v10  ;;  %227 = vst [vmem:[#allocation3] sm:$0xff] %v223_v11 }
  0x3f   : > { %v279_v16 = vld [vmem:[%s920_s1 + $0x8] sm:$0xff]  ;;  %v759_v17 = vmov 0.0   ;;  %v278_v18 = vld [vmem:[%s920_s1] sm:$0xff]  ;;  %vm760_vm0 = vmmov 0   ;;  %v248_v19 = vlaneseq  ;;  %vm259_vm1 = vcmask 130112  }
  0x40   : > { %562 = vmatprep.subr.mxu0 %v759_v17  ;;  %566 = vmatprep.mubr.msk.f32.mxu0 %vm760_vm0, %v759_v17  ;;  %vm262_vm2 = vcmask 122880   ;;  %vm280_vm3 = vcmask 130048   ;;  %v355_v38 = vld [vmem:[%s921_s2] sm:$0xf]  ;;  %vm360_vm4 = vcmask 1043456   ;;  %vm356_vm5 = vcmask 31744  }
  0x41   : > { %563 = vmatpush3.msra.mxu0 %v279_v16  ;;  %569 = vmatprep.subr.mxu1 %v759_v17  ;;  %v249_v20 = vand.u32 127, %v248_v19  ;;  %v251_v21 = vshrl.u32 %v248_v19, 7  ;;  %vm455_vm6 = vcmask 7168  }
  0x42   : > { %564 = vmatprep.subr.mxu0 %v759_v17  ;;  %571 = vmatprep.mubr.msk.f32.mxu1 %vm760_vm0, %v759_v17 }
  0x43   : > { %565 = vmatpush3.msra.mxu0 %v278_v18  ;;  %v254_v22 = vadd.s32 4294967288, %v249_v20  ;;  %v252_v25 = vsub.s32 %v249_v20, %v251_v21  ;;  %570 = vmatpush3.msk.msra.mxu1 %vm360_vm4, %v355_v38  ;;  %v446_v49 = vsub.s32 0, %v251_v21 }
  0x44   : > { %v232_v13 = vld [vmem:[#allocation2] sm:$0xff]  ;;  %v233_v15 = vld [vmem:[#allocation2 + $0x8] sm:$0xff] }
  0x45   : > { %v240_v12 = vld [vmem:[#allocation3 + $0x8] sm:$0xff]  ;;  %234 = vadd.xlane.f32.xlu0 %v232_v13  ;;  %v241_v14 = vld [vmem:[#allocation3] sm:$0xff]  ;;  %v257_v26 = vsub.s32 %v254_v22, %v251_v21 }
  0x46   : > { %242 = vmax.xlane.f32.xlu1 %v240_v12 }
  0x49   : > { %236 = vadd.xlane.f32.xlu0 %v233_v15 }
  0x4a   : > { %244 = vmax.xlane.f32.xlu1 %v241_v14 }
  0xce   : > { %v235_v24 = vpop.xlane.xlu0 %234 }
  0xcf   : > { %v243_v23 = vpop.xlane.xlu1 %242  ;;  %v238_v27 = vmul.f32 0.0026041667, %v235_v24 }
  0xd0   : > { %v269_v30 = vrot.slane %v243_v23, %v252_v25 }
  0xd1   : > { %v253_v33 = vrot.slane %v238_v27, %v252_v25 }
  0xd2   : > { %v237_v29 = vpop.xlane.xlu0 %236 }
  0xd3   : > { %v245_v28 = vpop.xlane.xlu1 %244  ;;  %v239_v32 = vmul.f32 0.0026041667, %v237_v29 }
  0xd4   : > { %v273_v31 = vrot.slane %v245_v28, %v257_v26 }
  0xd5   : > { %v258_v35 = vrot.slane %v239_v32, %v257_v26 }
  0xd6   : > { %v274_v34 = vsel %vm259_vm1, %v273_v31, %v269_v30 }
  0xd7   : > { %276 = vst.msk [vmem:[#allocation4 + $0x1] sm:$0x1] %vm262_vm2, %v274_v34  ;;  %v260_v36 = vsel %vm259_vm1, %v258_v35, %v253_v33 }
  0xd8   : > { %263 = vst.msk [vmem:[#allocation4] sm:$0x1] %vm262_vm2, %v260_v36 }
  0xdf   : > { %v277_v37 = vld [vmem:[#allocation4] sm:$0x3] }
  0xe0   : > { %567 = vmatmul.mubr.msk.f32.vlgmr.msra.gmra.mxu0 %vm280_vm3, %v277_v37 }
 0x1a0   : > { %v350_v39 = vpop.f32.mrf.mxu0 }
 0x1a1   : > { %v354_v40 = vmax.f32 %v350_v39, 0.0 }
 0x1a2   : > { %v568_v41 = vpop.f32.mrf.mxu0 }
 0x1a3   : > { %572 = vmatmul.mubr.msk.f32.vlgmr.msra.gmra.mxu1 %vm356_vm5, %v354_v40 }
 0x263   : > { %v430_v42 = vpop.f32.mrf.mxu1 }
 0x264   : > { %v435_v43 = vrot.slane %v430_v42, 1 }
 0x265   : > { %v573_v44 = vpop.f32.mrf.mxu1 }
 0x266   : > { %v437_v45 = vadd.f32 %v435_v43, %v430_v42 }
 0x268   : > { %v553_v46 = vmul.f32 -1.442695, %v437_v45 }
 0x26a   : > { %653 = vpow2.f32 %v553_v46 }
 0x277   : > { %v654_v47 = vpop.eup %653 }
 0x278   : > { %v441_v48 = vadd.f32 1.0, %v654_v47 }
 0x27a   : > { %655 = vrcp.f32 %v441_v48 }
 0x287   : > { %v656_v50 = vpop.eup %655 }
 0x288   : > { %v447_v51 = vrot.slane %v656_v50, %v446_v49 }
 0x28a   : > { %453 = vbcast.lane.b32.xlu1 %v447_v51, 264  ;;  %449 = vbcast.lane.b32.xlu0 %v447_v51, 256 }
 0x2fc   : > { %v454_v52 = vpop.permute.xlu1 %453  ;;  %v450_v53 = vpop.permute.xlu0 %449 }
 0x2fd   : > { %457 = vst.msk [vmem:[%s880_s20 + $0x8] sm:$0xff] %vm455_vm6, %v454_v52  ;;  %456 = vst.msk [vmem:[%s880_s20] sm:$0xff] %vm455_vm6, %v450_v53 }
 0x2fe PF: > { %s16_s19 = sadd.s32 1, %s751_s19   ;;  %s926_s12 = smov %s727_s13 }
 0x2ff   : > { %p13_p11 = scmp.ge.s32.totalorder %s16_s19, 8   ;;  %s927_s13 = smov %s731_s14 }
 0x300   : > { %s928_s14 = smov %s848_s5  ;;  %s929_s15 = smov %s743_s17 }
 0x301   : > { %s930_s16 = smov %s747_s18  ;;  %s931_s17 = smov %s934_s21 }
 0x302   : > { %s932_s18 = smov %s938_s22  ;;  %15 = sbr.rel (!%p13_p11) target bundleno = 5 (0x5), region = 80 }
 0x307   :  { %479 = vsyncpa [#allocation6], 1 }
 0x308   :  { %481 = vsyncpa [#allocation6 + $0x1], 1 }

</bundles_post_ra>
